<compile_context>
chip_gen: v7x
topology: tpu7x:2x2x1
jax: 0.10.0
libtpu: 0.0.40
codegen_flags: <defaults>
</compile_context>

<pallas_src>
import functools

import jax
import jax.numpy as jnp
from jax import lax
from jax.experimental import pallas as pl
from jax.experimental.pallas import tpu as pltpu


# Row-tile granularity: multiple of 256 (v6e/v7x MXU lane width) and of 512
# so the bf16 path also gets whole MXU pushes on the lane-dense N axis.
_LANE_GRANULE = 512
# Hard cap on rows/step.  VMEM budget at 8192 rows (worst case: row-major f32
# input, which is lane-padded 16 -> 128 in VMEM): x 2x4 MiB + out 2x256 KiB +
# a few [32, 8192] f32 intermediates (~4 MiB) ~= 13 MiB << 32 MiB scoped.
_MAX_ROW_TILE = 8192
_VMEM_LIMIT_BYTES = 32 * 1024 * 1024


def _round_up(n: int, m: int) -> int:
    return ((n + m - 1) // m) * m


def _choose_row_tile(rows: int, requested: int) -> int:
    """Pick rows/step: granule-aligned, VMEM-capped, and >= 4 grid steps when
    the input is large enough (megacore split on v7x, pipeline depth on v5e)."""
    tile = max(_LANE_GRANULE, _round_up(requested, _LANE_GRANULE))
    tile = min(tile, _MAX_ROW_TILE)
    # Cap so that large inputs still produce >= 4 steps (rounded *down* to the
    # granule so the step-count guarantee holds); never below one granule.
    four_step_cap = max(_LANE_GRANULE, (rows // 4) // _LANE_GRANULE * _LANE_GRANULE)
    return min(tile, four_step_cap)


def _mlp_kernel(x_ref,
                w1_ref, b1_ref,
                w2_ref, b2_ref,
                w3_ref, b3_ref,
                w4_ref, b4_ref,
                o_ref, *, x_channel_major: bool):
    """Fused 4-layer MLP on one row tile.

    x_ref:  [row_tile, C_in]  (default)  or  [C_in, row_tile]  (channel-major)
    w*_ref: [out_features, in_features]   (PyTorch nn.Linear layout)
    b*_ref: [out_features, 1]             (f32; broadcasts over the lane axis)
    o_ref:  [num_types, row_tile]         (rows on lanes -> lane-dense store)
    """
    cd = w1_ref.dtype  # compute dtype for MXU operands (bf16 or f32)

    # Cast x in-kernel (VPU) so the bf16 path never needs an extra XLA pass
    # over x in HBM; no-op if x already has the compute dtype.
    x = x_ref[...].astype(cd)

    if x_channel_major:
        # x is [C_in, R]: plain matmul, rows already on the lane axis.
        h = jnp.dot(w1_ref[...], x, preferred_element_type=jnp.float32)
    else:
        # x is [R, C_in]: contract the shared feature axis of both operands
        # (q @ k.T style), producing [H1, R] with rows on the lane axis.
        h = lax.dot_general(w1_ref[...], x, (((1,), (1,)), ((), ())),
                            preferred_element_type=jnp.float32)
    h = jnp.maximum(h + b1_ref[...], 0.0)

    h = jnp.dot(w2_ref[...], h.astype(cd), preferred_element_type=jnp.float32)
    h = jnp.maximum(h + b2_ref[...], 0.0)

    h = jnp.dot(w3_ref[...], h.astype(cd), preferred_element_type=jnp.float32)
    h = jnp.maximum(h + b3_ref[...], 0.0)

    h = jnp.dot(w4_ref[...], h.astype(cd), preferred_element_type=jnp.float32)
    o_ref[...] = (h + b4_ref[...]).astype(o_ref.dtype)  # lane-dense store


def intens_predictor_forward(x, params, *, row_tile=_MAX_ROW_TILE,
                             use_bf16=True, channel_first_output=False,
                             x_channel_major=False):
    """Forward pass of IntensPredictor.

    x: [B, S, C_in]  (or [C_in, B, S] if x_channel_major=True).
    params: w{i} as [out, in] (PyTorch layout), b{i} as [out, 1].
    use_bf16: bf16 matmul operands with f32 accumulation (default).  Set
      False for bit-accurate f32 results.
    channel_first_output: return [num_types, B, S] and skip the wrapper-side
      output transpose (preferred for perf-sensitive consumers).
    """
    w1, b1 = params["w1"], params["b1"]
    w2, b2 = params["w2"], params["b2"]
    w3, b3 = params["w3"], params["b3"]
    w4, b4 = params["w4"], params["b4"]
    num_types = w4.shape[0]

    if x_channel_major:
        C_in, B, S = x.shape
        x2d = x.reshape(C_in, B * S)
    else:
        B, S, C_in = x.shape
        x2d = x.reshape(B * S, C_in)
    rows = B * S

    wdt = jnp.bfloat16 if use_bf16 else jnp.float32
    ws = [w.astype(wdt) for w in (w1, w2, w3, w4)]
    bs = [b.astype(jnp.float32) for b in (b1, b2, b3, b4)]  # f32 bias add

    tile = _choose_row_tile(rows, row_tile)
    steps = pl.cdiv(rows, tile)
    if steps == 1:
        # Single step: use full-extent blocks (no (8,128) divisibility
        # requirement and no ragged handling).
        tile = rows

    if x_channel_major:
        x_spec = pl.BlockSpec((C_in, tile), lambda i: (0, i))
    else:
        x_spec = pl.BlockSpec((tile, C_in), lambda i: (i, 0))

    def full_spec(arr):
        # Weights/biases are tiny: full tensor every step, constant index_map
        # keeps them resident in VMEM.
        return pl.BlockSpec(arr.shape, lambda i: (0,) * arr.ndim)

    kernel = functools.partial(_mlp_kernel, x_channel_major=x_channel_major)

    out2d = pl.pallas_call(
        kernel,
        out_shape=jax.ShapeDtypeStruct((num_types, rows), x.dtype),
        grid=(steps,),
        in_specs=[
            x_spec,
            full_spec(ws[0]), full_spec(bs[0]),
            full_spec(ws[1]), full_spec(bs[1]),
            full_spec(ws[2]), full_spec(bs[2]),
            full_spec(ws[3]), full_spec(bs[3]),
        ],
        out_specs=pl.BlockSpec((num_types, tile), lambda i: (0, i)),
        compiler_params=pltpu.CompilerParams(
            dimension_semantics=("parallel",),
            vmem_limit_bytes=_VMEM_LIMIT_BYTES),
    )(x2d, ws[0], bs[0], ws[1], bs[1], ws[2], bs[2], ws[3], bs[3])

    if channel_first_output:
        return out2d.reshape(num_types, B, S)
    # Default matches the PyTorch module's [..., num_types] layout; this
    # transpose is one extra (small) XLA pass over the output — use
    # channel_first_output=True to avoid it when the consumer allows.
    return out2d.T.reshape(B, S, num_types)


def init_params(key, in_channels, hidden1, hidden2, hidden3, num_types):
    """PyTorch nn.Linear-style init: weights [out, in], biases [out, 1],
    uniform(+/- 1/sqrt(fan_in))."""
    dims = [(in_channels, hidden1), (hidden1, hidden2),
            (hidden2, hidden3), (hidden3, num_types)]
    params = {}
    for idx, (fan_in, fan_out) in enumerate(dims, start=1):
        key, kw, kb = jax.random.split(key, 3)
        bound = 1.0 / jnp.sqrt(jnp.float32(fan_in))
        params[f"w{idx}"] = jax.random.uniform(
            kw, (fan_out, fan_in), jnp.float32, minval=-bound, maxval=bound)
        params[f"b{idx}"] = jax.random.uniform(
            kb, (fan_out, 1), jnp.float32, minval=-bound, maxval=bound)
    return params


def _reference_forward(x2d, params):
    h = x2d
    for i in (1, 2, 3):
        h = jnp.maximum(h @ params[f"w{i}"].T + params[f"b{i}"][:, 0], 0.0)
    return h @ params["w4"].T + params["b4"][:, 0]


if __name__ == "__main__":
    in_channels, hidden1, hidden2, hidden3, num_types = 16, 32, 32, 32, 8

    key = jax.random.PRNGKey(0)
    key, kx1, kx2 = jax.random.split(key, 3)
    params = init_params(key, in_channels, hidden1, hidden2, hidden3, num_types)

    # --- Small shape: single full-extent tile. ---
    B, S = 2, 8
    x = jax.random.normal(kx1, (B, S, in_channels), jnp.float32)
    ref = _reference_forward(x.reshape(-1, in_channels), params).reshape(
        B, S, num_types)

    out_f32 = jax.block_until_ready(
        intens_predictor_forward(x, params, use_bf16=False))
    assert out_f32.shape == (B, S, num_types)
    assert jnp.allclose(out_f32, ref, atol=1e-5, rtol=1e-5), "f32 mismatch (small)"

    out_bf16 = jax.block_until_ready(intens_predictor_forward(x, params))
    assert jnp.allclose(out_bf16, ref, atol=1e-1, rtol=1e-1), "bf16 mismatch (small)"

    # --- Larger shape: multi-step grid (4 tiles of 512 rows), ragged last tile. ---
    B2, S2 = 4, 500  # rows = 2000
    x2 = jax.random.normal(kx2, (B2, S2, in_channels), jnp.float32)
    ref2 = _reference_forward(x2.reshape(-1, in_channels), params).reshape(
        B2, S2, num_types)

    out2_f32 = jax.block_until_ready(
        intens_predictor_forward(x2, params, use_bf16=False))
    assert out2_f32.shape == (B2, S2, num_types)
    assert jnp.allclose(out2_f32, ref2, atol=1e-5, rtol=1e-5), "f32 mismatch (large)"

    out2_bf16 = jax.block_until_ready(intens_predictor_forward(x2, params))
    assert jnp.allclose(out2_bf16, ref2, atol=1e-1, rtol=1e-1), "bf16 mismatch (large)"

    # --- Channel-first output: skips the wrapper-side output transpose. ---
    out2_cf = jax.block_until_ready(
        intens_predictor_forward(x2, params, use_bf16=False,
                                 channel_first_output=True))
    assert out2_cf.shape == (num_types, B2, S2)
    assert jnp.allclose(jnp.moveaxis(out2_cf, 0, -1), ref2,
                        atol=1e-5, rtol=1e-5), "channel-first mismatch"

    # --- Channel-major input path (for producers that supply [C_in, B, S]). ---
    x2_cm = jnp.transpose(x2, (2, 0, 1))
    out2_cm = jax.block_until_ready(
        intens_predictor_forward(x2_cm, params, use_bf16=False,
                                 x_channel_major=True))
    assert jnp.allclose(out2_cm, ref2, atol=1e-5, rtol=1e-5), "channel-major mismatch"

    print("KERNEL_OK")
</pallas_src>

<mosaic_0001>
module attributes {stable_mosaic.version = 11 : i64} {
  func.func @_mlp_kernel(%arg0: i32, %arg1: memref<16x16xf32, #tpu.memory_space<vmem>>, %arg2: memref<32x16xf32, #tpu.memory_space<vmem>>, %arg3: memref<32x1xf32, #tpu.memory_space<vmem>>, %arg4: memref<32x32xf32, #tpu.memory_space<vmem>>, %arg5: memref<32x1xf32, #tpu.memory_space<vmem>>, %arg6: memref<32x32xf32, #tpu.memory_space<vmem>>, %arg7: memref<32x1xf32, #tpu.memory_space<vmem>>, %arg8: memref<8x32xf32, #tpu.memory_space<vmem>>, %arg9: memref<8x1xf32, #tpu.memory_space<vmem>>, %arg10: memref<8x16xf32, #tpu.memory_space<vmem>>) attributes {dimension_semantics = [#tpu.dimension_semantics<parallel>], iteration_bounds = array<i64: 1>, scalar_prefetch = 0 : i64, scratch_operands = 0 : i64, tpu.core_type = #tpu.core_type<tc>, window_params = [{transform_indices = @transform_0, window_bounds = array<i64: 16, 16>}, {pipeline_mode = #tpu.pipeline_mode<synchronous>, transform_indices = @transform_1, window_bounds = array<i64: 32, 16>}, {pipeline_mode = #tpu.pipeline_mode<synchronous>, transform_indices = @transform_2, window_bounds = array<i64: 32, 1>}, {pipeline_mode = #tpu.pipeline_mode<synchronous>, transform_indices = @transform_3, window_bounds = array<i64: 32, 32>}, {pipeline_mode = #tpu.pipeline_mode<synchronous>, transform_indices = @transform_4, window_bounds = array<i64: 32, 1>}, {pipeline_mode = #tpu.pipeline_mode<synchronous>, transform_indices = @transform_5, window_bounds = array<i64: 32, 32>}, {pipeline_mode = #tpu.pipeline_mode<synchronous>, transform_indices = @transform_6, window_bounds = array<i64: 32, 1>}, {pipeline_mode = #tpu.pipeline_mode<synchronous>, transform_indices = @transform_7, window_bounds = array<i64: 8, 32>}, {pipeline_mode = #tpu.pipeline_mode<synchronous>, transform_indices = @transform_8, window_bounds = array<i64: 8, 1>}, {transform_indices = @transform_9, window_bounds = array<i64: 8, 16>}]} {
    %c0 = arith.constant 0 : index
    %c0_0 = arith.constant 0 : index
    %0 = vector.load %arg1[%c0, %c0_0] : memref<16x16xf32, #tpu.memory_space<vmem>>, vector<16x16xf32>
    %c0_1 = arith.constant 0 : index
    %c0_2 = arith.constant 0 : index
    %1 = vector.load %arg2[%c0_1, %c0_2] : memref<32x16xf32, #tpu.memory_space<vmem>>, vector<32x16xf32>
    %cst = arith.constant dense<0.000000e+00> : vector<32x16xf32>
    %2 = tpu.matmul %1, %0, %cst {dimension_numbers = #tpu.dot_dimension_numbers<[1], [1], [0], [0], [0, 0, 1, 0], [], []>} : vector<32x16xf32>, vector<16x16xf32>, vector<32x16xf32> -> vector<32x16xf32>
    %c0_3 = arith.constant 0 : index
    %c0_4 = arith.constant 0 : index
    %3 = vector.load %arg3[%c0_3, %c0_4] : memref<32x1xf32, #tpu.memory_space<vmem>>, vector<32x1xf32>
    %4 = vector.broadcast %3 : vector<32x1xf32> to vector<32x16xf32>
    %5 = arith.addf %2, %4 : vector<32x16xf32>
    %cst_5 = arith.constant 0.000000e+00 : f32
    %6 = vector.broadcast %cst_5 : f32 to vector<32x16xf32>
    %7 = arith.maximumf %5, %6 : vector<32x16xf32>
    %c0_6 = arith.constant 0 : index
    %c0_7 = arith.constant 0 : index
    %8 = vector.load %arg4[%c0_6, %c0_7] : memref<32x32xf32, #tpu.memory_space<vmem>>, vector<32x32xf32>
    %cst_8 = arith.constant dense<0.000000e+00> : vector<32x16xf32>
    %9 = tpu.matmul %8, %7, %cst_8 {dimension_numbers = #tpu.dot_dimension_numbers<[1], [0], [0], [1], [0, 0, 1, 1], [], []>} : vector<32x32xf32>, vector<32x16xf32>, vector<32x16xf32> -> vector<32x16xf32>
    %c0_9 = arith.constant 0 : index
    %c0_10 = arith.constant 0 : index
    %10 = vector.load %arg5[%c0_9, %c0_10] : memref<32x1xf32, #tpu.memory_space<vmem>>, vector<32x1xf32>
    %11 = vector.broadcast %10 : vector<32x1xf32> to vector<32x16xf32>
    %12 = arith.addf %9, %11 : vector<32x16xf32>
    %cst_11 = arith.constant 0.000000e+00 : f32
    %13 = vector.broadcast %cst_11 : f32 to vector<32x16xf32>
    %14 = arith.maximumf %12, %13 : vector<32x16xf32>
    %c0_12 = arith.constant 0 : index
    %c0_13 = arith.constant 0 : index
    %15 = vector.load %arg6[%c0_12, %c0_13] : memref<32x32xf32, #tpu.memory_space<vmem>>, vector<32x32xf32>
    %cst_14 = arith.constant dense<0.000000e+00> : vector<32x16xf32>
    %16 = tpu.matmul %15, %14, %cst_14 {dimension_numbers = #tpu.dot_dimension_numbers<[1], [0], [0], [1], [0, 0, 1, 1], [], []>} : vector<32x32xf32>, vector<32x16xf32>, vector<32x16xf32> -> vector<32x16xf32>
    %c0_15 = arith.constant 0 : index
    %c0_16 = arith.constant 0 : index
    %17 = vector.load %arg7[%c0_15, %c0_16] : memref<32x1xf32, #tpu.memory_space<vmem>>, vector<32x1xf32>
    %18 = vector.broadcast %17 : vector<32x1xf32> to vector<32x16xf32>
    %19 = arith.addf %16, %18 : vector<32x16xf32>
    %cst_17 = arith.constant 0.000000e+00 : f32
    %20 = vector.broadcast %cst_17 : f32 to vector<32x16xf32>
    %21 = arith.maximumf %19, %20 : vector<32x16xf32>
    %c0_18 = arith.constant 0 : index
    %c0_19 = arith.constant 0 : index
    %22 = vector.load %arg8[%c0_18, %c0_19] : memref<8x32xf32, #tpu.memory_space<vmem>>, vector<8x32xf32>
    %cst_20 = arith.constant dense<0.000000e+00> : vector<8x16xf32>
    %23 = tpu.matmul %22, %21, %cst_20 {dimension_numbers = #tpu.dot_dimension_numbers<[1], [0], [0], [1], [0, 0, 1, 1], [], []>} : vector<8x32xf32>, vector<32x16xf32>, vector<8x16xf32> -> vector<8x16xf32>
    %c0_21 = arith.constant 0 : index
    %c0_22 = arith.constant 0 : index
    %24 = vector.load %arg9[%c0_21, %c0_22] : memref<8x1xf32, #tpu.memory_space<vmem>>, vector<8x1xf32>
    %25 = vector.broadcast %24 : vector<8x1xf32> to vector<8x16xf32>
    %26 = arith.addf %23, %25 : vector<8x16xf32>
    %c0_23 = arith.constant 0 : index
    %c0_24 = arith.constant 0 : index
    %27 = vector.load %arg10[%c0_23, %c0_24] : memref<8x16xf32, #tpu.memory_space<vmem>>, vector<8x16xf32>
    tpu.vector_store %arg10[%c0_23, %c0_24], %26 {strides = array<i32>} : memref<8x16xf32, #tpu.memory_space<vmem>>, vector<8x16xf32>,
    return
  }
  func.func @transform_0(%arg0: i32) -> (i32, i32) {
    %c0_i32 = arith.constant 0 : i32
    %c0_i32_0 = arith.constant 0 : i32
    return %arg0, %c0_i32 : i32, i32
  }
  func.func @transform_1(%arg0: i32) -> (i32, i32) {
    %c0_i32 = arith.constant 0 : i32
    %c0_i32_0 = arith.constant 0 : i32
    %c0_i32_1 = arith.constant 0 : i32
    return %c0_i32, %c0_i32_0 : i32, i32
  }
  func.func @transform_2(%arg0: i32) -> (i32, i32) {
    %c0_i32 = arith.constant 0 : i32
    %c0_i32_0 = arith.constant 0 : i32
    %c0_i32_1 = arith.constant 0 : i32
    return %c0_i32, %c0_i32_0 : i32, i32
  }
  func.func @transform_3(%arg0: i32) -> (i32, i32) {
    %c0_i32 = arith.constant 0 : i32
    %c0_i32_0 = arith.constant 0 : i32
    %c0_i32_1 = arith.constant 0 : i32
    return %c0_i32, %c0_i32_0 : i32, i32
  }
  func.func @transform_4(%arg0: i32) -> (i32, i32) {
    %c0_i32 = arith.constant 0 : i32
    %c0_i32_0 = arith.constant 0 : i32
    %c0_i32_1 = arith.constant 0 : i32
    return %c0_i32, %c0_i32_0 : i32, i32
  }
  func.func @transform_5(%arg0: i32) -> (i32, i32) {
    %c0_i32 = arith.constant 0 : i32
    %c0_i32_0 = arith.constant 0 : i32
    %c0_i32_1 = arith.constant 0 : i32
    return %c0_i32, %c0_i32_0 : i32, i32
  }
  func.func @transform_6(%arg0: i32) -> (i32, i32) {
    %c0_i32 = arith.constant 0 : i32
    %c0_i32_0 = arith.constant 0 : i32
    %c0_i32_1 = arith.constant 0 : i32
    return %c0_i32, %c0_i32_0 : i32, i32
  }
  func.func @transform_7(%arg0: i32) -> (i32, i32) {
    %c0_i32 = arith.constant 0 : i32
    %c0_i32_0 = arith.constant 0 : i32
    %c0_i32_1 = arith.constant 0 : i32
    return %c0_i32, %c0_i32_0 : i32, i32
  }
  func.func @transform_8(%arg0: i32) -> (i32, i32) {
    %c0_i32 = arith.constant 0 : i32
    %c0_i32_0 = arith.constant 0 : i32
    %c0_i32_1 = arith.constant 0 : i32
    return %c0_i32, %c0_i32_0 : i32, i32
  }
  func.func @transform_9(%arg0: i32) -> (i32, i32) {
    %c0_i32 = arith.constant 0 : i32
    %c0_i32_0 = arith.constant 0 : i32
    return %c0_i32, %arg0 : i32, i32
  }
}

</mosaic_0001>

<bundles_post_ra>
// kernel: tpu_custom_call.1
= control target key start
LH: loop header
LB: loop body
LE: loop exit
PB: predicated region body
PF: predicated region fallthrough
CT: control target
= control target key end

     0   :  { %vm63_vm0 = vcmask 130048   ;;  %v675_v4 = vmov 0   ;;  %s842_s0 = inlined_call_operand.vmem [shape: f32[16,16], index: 0, kind: input, shape index: {}]   ;;  %s843_s1 = inlined_call_operand.vmem [shape: f32[32,16], index: 1, kind: input, shape index: {}]   ;;  %s844_s2 = inlined_call_operand.vmem [shape: f32[32,1], index: 2, kind: input, shape index: {}]   ;;  %s845_s3 = inlined_call_operand.vmem [shape: f32[32,32], index: 3, kind: input, shape index: {}]   ;;  %s846_s4 = inlined_call_operand.vmem [shape: f32[32,1], index: 4, kind: input, shape index: {}]   ;;  %s847_s5 = inlined_call_operand.vmem [shape: f32[32,32], index: 5, kind: input, shape index: {}]   ;;  %s848_s6 = inlined_call_operand.vmem [shape: f32[32,1], index: 6, kind: input, shape index: {}]   ;;  %s849_s7 = inlined_call_operand.vmem [shape: f32[8,32], index: 7, kind: input, shape index: {}]   ;;  %s850_s8 = inlined_call_operand.vmem [shape: f32[8,1], index: 8, kind: input, shape index: {}]   ;;  %s851_s9 = inlined_call_operand.hbm [shape: f32[8,16], index: 9, kind: output, shape index: {}]  }
   0x1   :  { %v33_v0 = vld [vmem:[%s842_s0] sm:$0xff]  ;;  %v34_v1 = vld [vmem:[%s842_s0 + $0x8] sm:$0xff]  ;;  %vm617_vm1 = vmpackc.low %vm63_vm0, %vm63_vm0  ;;  %649 = vset.pattern.permute.xlu0 %v675_v4  ;;  %650 = vset.pattern.permute.xlu1 %v675_v4 }
   0x2   :  { %v35_v2 = vld [vmem:[%s843_s1] sm:$0xff]  ;;  %v616_v3 = vpack.c.bf16 %v34_v1, %v33_v0  ;;  %v41_v6 = vld [vmem:[%s844_s2 + $0x10] sm:$0xff]  ;;  %v40_v7 = vld [vmem:[%s844_s2 + $0x8] sm:$0xff] }
   0x3   :  { %571 = vmatprep.mubr.msk.f32.mxu0 %vm63_vm0, %v35_v2  ;;  %v39_v5 = vld [vmem:[%s844_s2] sm:$0xff]  ;;  %55 = vperm.xlu1 %650, %v41_v6   ;;  %v42_v8 = vld [vmem:[%s844_s2 + $0x18] sm:$0xff] }
   0x4   :  { %618 = vmatprep.subr.msk.bf16.mxu0 %vm617_vm1, %v616_v3  ;;  %45 = vperm.xlu0 %649, %v39_v5  }
   0x5   :  { %621 = vmatpush3.bf16.xpose.msk.msra.mxu0 %vm617_vm1, %v616_v3 }
   0x6   :  { %14 = vsyncpa [#allocation3], 0  ;;  %v36_v9 = vld [vmem:[%s843_s1 + $0x8] sm:$0xff]  ;;  %v175_v10 = vld [vmem:[%s846_s4] sm:$0xff]  ;;  %vm199_vm2 = vcmask 261120   ;;  %v676_v1 = vmov 0.0|0.0  }
   0x7   :  { %60 = vperm.xlu1 %650, %v42_v8   ;;  %v37_v11 = vld [vmem:[%s843_s1 + $0x10] sm:$0xff]  ;;  %v176_v12 = vld [vmem:[%s846_s4 + $0x8] sm:$0xff]  ;;  %v38_v13 = vld [vmem:[%s843_s1 + $0x18] sm:$0xff]  ;;  %vm677_vm3 = vmmov 0   ;;  %v678_v2 = vmov 0.0   ;;  %s679_s13 = smov [#allocation2]  }
   0x8   :  { %50 = vperm.xlu0 %649, %v40_v7   ;;  %v177_v14 = vld [vmem:[%s846_s4 + $0x10] sm:$0xff]  ;;  %v178_v15 = vld [vmem:[%s846_s4 + $0x18] sm:$0xff]  ;;  %v305_v16 = vld [vmem:[%s848_s6] sm:$0xff]  ;;  %s517_s14 = sshll.u32 %s679_s13, 4  ;;  %s518_s14 = int_to_ptr.vmem [resolvable:$true] %s517_s14 }
   0x9   :  { %v306_v17 = vld [vmem:[%s848_s6 + $0x8] sm:$0xff]  ;;  %v307_v18 = vld [vmem:[%s848_s6 + $0x10] sm:$0xff]  ;;  %v308_v19 = vld [vmem:[%s848_s6 + $0x18] sm:$0xff]  ;;  %s651_s15 = scalar_lea.vmem %s518_s14, 128  ;;  %p656_p1 = scmp.lt.s32.totalorder %s518_s14, %s518_s14 }
   0xa   :  { %v431_v20 = vld [vmem:[%s850_s8] sm:$0xff]  ;;  %v172_v40 = vld [vmem:[%s845_s3 + $0x8] sm:$0xff]  ;;  %v173_v41 = vld [vmem:[%s845_s3 + $0x10] sm:$0xff]  ;;  %p652_p0 = scmp.ne.s32.totalorder %s518_s14, %s651_s15  ;;  %p657_p2 = scmp.lt.s32.totalorder %s651_s15, %s651_s15 }
   0xb   :  { %186 = vperm.xlu1 %650, %v176_v12   ;;  %v171_v21 = vld [vmem:[%s845_s3] sm:$0xff]  ;;  %v174_v42 = vld [vmem:[%s845_s3 + $0x18] sm:$0xff]  ;;  %v302_v62 = vld [vmem:[%s847_s5 + $0x8] sm:$0xff] }
   0xc   :  { %572 = vmatmul.mubr.msk.f32.vlgmr.msra.gmra.mrb[0].mxu0 %vm63_vm0, %v36_v9  ;;  %181 = vperm.xlu0 %649, %v175_v10   ;;  %v301_v43 = vld [vmem:[%s847_s5] sm:$0xff]  ;;  %v303_v63 = vld [vmem:[%s847_s5 + $0x10] sm:$0xff]  ;;  %v304_v0 = vld [vmem:[%s847_s5 + $0x18] sm:$0xff]  ;;  %p658_p3 = por %p657_p2, %p656_p1 }
   0xd   :  { %574 = vmatprep.mubr.msk.f32.mxu0 %vm63_vm0, %v37_v11  ;;  %585 = vmatprep.mubr.msk.f32.mxu1 %vm199_vm2, %v171_v21  ;;  %v430_v21 = vld [vmem:[%s849_s7] sm:$0xff] }
   0xe   :  { %p659_p4 = pnand %p658_p3, %p652_p0 }
   0xf   :  { %196 = vperm.xlu1 %650, %v178_v15  }
  0x10   :  { %575 = vmatmul.mubr.msk.f32.gmra.mrb[2].mxu0 %vm63_vm0, %v38_v13  ;;  %191 = vperm.xlu0 %649, %v177_v14  }
  0x11   :  { %599 = vmatprep.mubr.msk.f32.mxu0 %vm199_vm2, %v301_v43 }
  0x13   :  { %316 = vperm.xlu1 %650, %v306_v17  }
  0x14   :  { %311 = vperm.xlu0 %649, %v305_v16  }
  0x17   :  { %326 = vperm.xlu1 %650, %v308_v19  }
  0x18   :  { %321 = vperm.xlu0 %649, %v307_v18  }
  0x1c   :  { %434 = vperm.xlu0 %649, %v431_v20  }
  0x82   :  { %v56_v23 = vpop.permute.xlu1 %55 }
  0x83   :  { %v46_v22 = vpop.permute.xlu0 %45 }
  0x86   :  { %v61_v30 = vpop.permute.xlu1 %60 }
  0x87   :  { %v51_v24 = vpop.permute.xlu0 %50 }
  0x8a   :  { %v187_v44 = vpop.permute.xlu1 %186 }
  0x8b   :  { %v182_v45 = vpop.permute.xlu0 %181 }
  0x8e   :  { %v197_v51 = vpop.permute.xlu1 %196 }
  0x8f   :  { %v192_v54 = vpop.permute.xlu0 %191 }
  0x92   :  { %v317_v3 = vpop.permute.xlu1 %316 }
  0x93   :  { %v312_v4 = vpop.permute.xlu0 %311 }
  0x96   :  { %v327_v10 = vpop.permute.xlu1 %326 }
  0x97   :  { %v322_v13 = vpop.permute.xlu0 %321 }
  0xdf   :  { %v573_v25 = vpop.f32.mrb[0].mxu0 }
  0xe0   :  { %v154_v26 = vadd.f32 %v573_v25, %v51_v24  ;;  %v148_v27 = vpop.f32.mrb[1].mxu0 }
  0xe1   :  { %v149_v28 = vadd.f32 %v148_v27, %v46_v22  ;;  %v435_v22 = vpop.permute.xlu0 %434 }
  0xe2   :  { %v168_v29 = vmax.f32 %v154_v26, 0.0 }
  0xe3   :  { %v167_v31 = vmax.f32 %v149_v28, 0.0  ;;  %v576_v32 = vpop.f32.mrb[2].mxu0 }
  0xe4   :  { %v164_v33 = vadd.f32 %v576_v32, %v61_v30  ;;  %v158_v34 = vpop.f32.mrb[3].mxu0 }
  0xe5   :  { %v159_v35 = vadd.f32 %v158_v34, %v56_v23  ;;  %v622_v36 = vpack.c.bf16 %v168_v29, %v167_v31 }
  0xe6   :  { %v170_v37 = vmax.f32 %v164_v33, 0.0 }
  0xe7   :  { %v169_v38 = vmax.f32 %v159_v35, 0.0  ;;  %623 = vmatprep.subr.bf16.mxu1 %v622_v36 }
  0xe8   :  { %625 = vmatpush3.bf16.msra.mxu1 %v622_v36 }
  0xe9   :  { %v626_v39 = vpack.c.bf16 %v170_v37, %v169_v38 }
  0xeb   :  { %627 = vmatprep.subr.bf16.mxu1 %v626_v39 }
  0xec   :  { %629 = vmatpush3.bf16.msra.mxu1 %v626_v39 }
  0xed   :  { %638 = vmatprep.subr.bf16.mxu1 %v676_v1 }
  0xef   :  { %586 = vmatmul.mubr.msk.f32.vlgmr.msra.gmra.mrb[0].mxu1 %vm199_vm2, %v172_v40 }
  0xf0   :  { %588 = vmatprep.mubr.msk.f32.mxu1 %vm199_vm2, %v173_v41 }
  0xf3   :  { %589 = vmatmul.mubr.msk.f32.gmra.mrb[2].mxu1 %vm199_vm2, %v174_v42 }
  0xf4   :  { %613 = vmatprep.mubr.msk.f32.mxu1 %vm677_vm3, %v678_v2 }
 0x1c2   :  { %v587_v46 = vpop.f32.mrb[0].mxu1 }
 0x1c3   :  { %v284_v47 = vadd.f32 %v587_v46, %v187_v44  ;;  %v278_v48 = vpop.f32.mrb[1].mxu1 }
 0x1c4   :  { %v279_v49 = vadd.f32 %v278_v48, %v182_v45 }
 0x1c5   :  { %v298_v50 = vmax.f32 %v284_v47, 0.0 }
 0x1c6   :  { %v297_v52 = vmax.f32 %v279_v49, 0.0  ;;  %v590_v53 = vpop.f32.mrb[2].mxu1 }
 0x1c7   :  { %v294_v55 = vadd.f32 %v590_v53, %v197_v51  ;;  %v288_v56 = vpop.f32.mrb[3].mxu1 }
 0x1c8   :  { %v630_v57 = vpack.c.bf16 %v298_v50, %v297_v52  ;;  %v289_v58 = vadd.f32 %v288_v56, %v192_v54 }
 0x1c9   :  { %v300_v59 = vmax.f32 %v294_v55, 0.0 }
 0x1ca   :  { %v299_v60 = vmax.f32 %v289_v58, 0.0  ;;  %631 = vmatprep.subr.bf16.mxu0 %v630_v57 }
 0x1cb   :  { %633 = vmatpush3.bf16.msra.mxu0 %v630_v57 }
 0x1cc   :  { %v634_v61 = vpack.c.bf16 %v300_v59, %v299_v60 }
 0x1ce   :  { %635 = vmatprep.subr.bf16.mxu0 %v634_v61 }
 0x1cf   :  { %637 = vmatpush3.bf16.msra.mxu0 %v634_v61 }
 0x1d2   :  { %600 = vmatmul.mubr.msk.f32.vlgmr.msra.gmra.mrb[4].mxu0 %vm199_vm2, %v302_v62 }
 0x1d3   :  { %602 = vmatprep.mubr.msk.f32.mxu0 %vm199_vm2, %v303_v63 }
 0x1d6   :  { %603 = vmatmul.mubr.msk.f32.gmra.mrb[6].mxu0 %vm199_vm2, %v304_v0 }
 0x2a5   :  { %v601_v5 = vpop.f32.mrb[4].mxu0 }
 0x2a6   :  { %v413_v6 = vadd.f32 %v601_v5, %v317_v3  ;;  %v407_v7 = vpop.f32.mrb[5].mxu0 }
 0x2a7   :  { %v408_v8 = vadd.f32 %v407_v7, %v312_v4 }
 0x2a8   :  { %v427_v9 = vmax.f32 %v413_v6, 0.0 }
 0x2a9   :  { %v426_v11 = vmax.f32 %v408_v8, 0.0  ;;  %v604_v12 = vpop.f32.mrb[6].mxu0 }
 0x2aa   :  { %v423_v14 = vadd.f32 %v604_v12, %v327_v10  ;;  %v417_v15 = vpop.f32.mrb[7].mxu0 }
 0x2ab   :  { %v639_v16 = vpack.c.bf16 %v427_v9, %v426_v11  ;;  %v418_v17 = vadd.f32 %v417_v15, %v322_v13 }
 0x2ac   :  { %v429_v18 = vmax.f32 %v423_v14, 0.0 }
 0x2ad   :  { %v428_v19 = vmax.f32 %v418_v17, 0.0  ;;  %640 = vmatpush3.bf16.msra.mxu1 %v639_v16 }
 0x2ae   :  { %641 = vmatprep.subr.bf16.mxu1 %v676_v1 }
 0x2af   :  { %v642_v20 = vpack.c.bf16 %v429_v18, %v428_v19 }
 0x2b1   :  { %643 = vmatpush3.bf16.msra.mxu1 %v642_v20 }
 0x2b4   :  { %614 = vmatmul.mubr.msk.f32.vlgmr.msra.gmra.mrb[4].mxu1 %vm199_vm2, %v430_v21 }
 0x387   :  { %v506_v23 = vpop.f32.mrb[4].mxu1 }
 0x388   :  { %v507_v24 = vadd.f32 %v506_v23, %v435_v22  ;;  %v615_v25 = vpop.f32.mrb[5].mxu1 }
 0x38a   :  { %510 = vst.msk [vmem:[#allocation2] sm:$0xff] %vm63_vm0, %v507_v24 }
 0x38b   :  { %662 = shalt.err (!%p659_p4)
}
 0x38c   :  { %s663_s0 = scalar_lea.hbm %s851_s9, 128 }
 0x38d   :  { %p664_p5 = scmp.ne.s32.totalorder %s851_s9, %s663_s0  ;;  %p667_p6 = scmp.lt.u32.totalorder %s663_s0, %s851_s9 }
 0x38f   :  { %p669_p7 = pnand %p667_p6, %p664_p5 }
 0x391   :  { %672 = shalt.err (!%p669_p7)
}
 0x392   :  { %520 = dma.vmem_to_hbm [thread:$0]  %s518_s14, 128, %s851_s9, [#allocation3]  }
 0x393   :  { %673 = dma.done.wait [#allocation3], 128  }
 0x394   :  { %674 = vsyncadd [#allocation3], 4294967168 }
 0x395   :  { %524 = vsyncpa [#allocation3], 1 }

</bundles_post_ra>
